<compile_context>
chip_gen: v5e
topology: v5e:2x2
jax: 0.10.0
libtpu: 0.0.40
codegen_flags: <defaults>
</compile_context>

<pallas_src>
import functools

import jax
import jax.numpy as jnp
from jax import lax
from jax.experimental import pallas as pl
from jax.experimental.pallas import tpu as pltpu


def textrnn_kernel(x_ref, h0_ref, wih_ref, whh_ref, bih_ref, bhh_ref,
                   wfc_ref, bfc_ref, out_ref):
    """Full tanh-RNN recurrence + final Linear on one core.

    x_ref:   (seq*batch, n_class)  VMEM  (time-major, flattened)
    h0_ref:  (batch, n_hidden)     VMEM
    wih_ref: (n_hidden, n_class)   VMEM  (native PyTorch layout)
    whh_ref: (n_hidden, n_hidden)  VMEM  (native PyTorch layout)
    bih_ref: (1, n_hidden)         VMEM
    bhh_ref: (1, n_hidden)         VMEM
    wfc_ref: (n_class, n_hidden)   VMEM  (native PyTorch layout)
    bfc_ref: (1, n_class)          VMEM
    out_ref: (batch, n_class)      VMEM
    """
    batch, _ = h0_ref.shape
    seq = x_ref.shape[0] // batch

    # a @ b.T : contract last dim of lhs with last dim of rhs.
    contract_last = (((1,), (1,)), ((), ()))

    # (1)+(4) Hoisted input projection with fused bias (b_ih + b_hh),
    # broadcast once. Shape: (seq*batch, n_hidden).
    xp = lax.dot_general(x_ref[...], wih_ref[...], contract_last,
                         preferred_element_type=jnp.float32)
    xp = xp + (bih_ref[...] + bhh_ref[...])

    # (2)+(3) Recurrence: hidden state lives in vregs; per step only
    # h = tanh(xp[t] + h @ W_hh^T).  seq is static, so this unrolls fully and
    # xp slices are static contiguous row ranges (time-major flattening).
    w_hh = whh_ref[...]
    h = h0_ref[...]
    for t in range(seq):
        hp = lax.dot_general(h, w_hh, contract_last,
                             preferred_element_type=jnp.float32)
        h = jnp.tanh(xp[t * batch:(t + 1) * batch, :] + hp)

    # Final Linear on the last hidden state (== out[-1]).
    out_ref[...] = (lax.dot_general(h, wfc_ref[...], contract_last,
                                    preferred_element_type=jnp.float32)
                    + bfc_ref[...]).astype(out_ref.dtype)


@jax.jit
def textrnn_forward(hidden, X, params):
    """hidden: (1, batch, n_hidden)  X: (batch, seq, n_class) -> (batch, n_class)"""
    w_ih, w_hh, b_ih, b_hh, w_fc, b_fc = (
        params["w_ih"], params["w_hh"], params["b_ih"], params["b_hh"],
        params["w_fc"], params["b_fc"])

    batch, seq, n_class = X.shape
    n_hidden = w_hh.shape[0]

    # Time-major flatten so the hoisted projection's per-step slices are
    # contiguous rows (single tiny copy, fused into this jitted program).
    # Weights go in untouched in their native PyTorch layouts; biases are
    # reshaped to 2D for clean VMEM layout (metadata-only reshape).
    x2d = jnp.transpose(X, (1, 0, 2)).reshape(seq * batch, n_class)
    h0 = hidden[0]                                 # (batch, n_hidden)
    bih2 = b_ih.reshape(1, n_hidden)
    bhh2 = b_hh.reshape(1, n_hidden)
    bfc2 = b_fc.reshape(1, n_class)

    vmem = pl.BlockSpec(memory_space=pltpu.MemorySpace.VMEM)

    # Total VMEM footprint ~12 KB -> no grid / tiling needed at these shapes.
    # TODO(synk): if batch grows, add a ("parallel",) grid over batch so v7x's
    # second TensorCore is used.
    return pl.pallas_call(
        textrnn_kernel,
        out_shape=jax.ShapeDtypeStruct((batch, n_class), jnp.float32),
        in_specs=[vmem] * 8,
        out_specs=vmem,
    )(x2d, h0, w_ih, w_hh, bih2, bhh2, w_fc, bfc2)


def textrnn_reference(hidden, X, params):
    """Pure-JAX reference mirroring PyTorch nn.RNN(tanh) + nn.Linear."""
    w_ih, w_hh, b_ih, b_hh, w_fc, b_fc = (
        params["w_ih"], params["w_hh"], params["b_ih"], params["b_hh"],
        params["w_fc"], params["b_fc"])
    x_tm = jnp.transpose(X, (1, 0, 2))   # (seq, batch, n_class)
    h = hidden[0]
    for t in range(x_tm.shape[0]):
        h = jnp.tanh(x_tm[t] @ w_ih.T + b_ih + h @ w_hh.T + b_hh)
    return h @ w_fc.T + b_fc


if __name__ == "__main__":
    # Small shapes implied by the module: seq of one-hot tokens over a vocab
    # of n_class, RNN hidden of n_hidden.
    batch, seq, n_class, n_hidden = 4, 8, 16, 32

    key = jax.random.PRNGKey(0)
    k = jax.random.split(key, 8)

    # Deterministic "PyTorch-style" uniform(-1/sqrt(n_hidden), 1/sqrt(n_hidden)) init.
    bound = 1.0 / jnp.sqrt(jnp.float32(n_hidden))
    params = {
        "w_ih": jax.random.uniform(k[0], (n_hidden, n_class), jnp.float32, -bound, bound),
        "w_hh": jax.random.uniform(k[1], (n_hidden, n_hidden), jnp.float32, -bound, bound),
        "b_ih": jax.random.uniform(k[2], (n_hidden,), jnp.float32, -bound, bound),
        "b_hh": jax.random.uniform(k[3], (n_hidden,), jnp.float32, -bound, bound),
        "w_fc": jax.random.uniform(k[4], (n_class, n_hidden), jnp.float32, -bound, bound),
        "b_fc": jax.random.uniform(k[5], (n_class,), jnp.float32, -bound, bound),
    }

    X = jax.random.normal(k[6], (batch, seq, n_class), jnp.float32)
    hidden = jnp.zeros((1, batch, n_hidden), jnp.float32)

    out = jax.block_until_ready(textrnn_forward(hidden, X, params))
    ref = jax.block_until_ready(textrnn_reference(hidden, X, params))

    assert out.shape == (batch, n_class), out.shape
    assert jnp.allclose(out, ref, atol=1e-5, rtol=1e-5), \
        f"max abs err {jnp.max(jnp.abs(out - ref))}"
    print("KERNEL_OK")
</pallas_src>

<mosaic_0001>
module attributes {stable_mosaic.version = 11 : i64} {
  func.func @textrnn_kernel(%arg0: memref<32x16xf32, #tpu.memory_space<vmem>>, %arg1: memref<4x32xf32, #tpu.memory_space<vmem>>, %arg2: memref<32x16xf32, #tpu.memory_space<vmem>>, %arg3: memref<32x32xf32, #tpu.memory_space<vmem>>, %arg4: memref<1x32xf32, #tpu.memory_space<vmem>>, %arg5: memref<1x32xf32, #tpu.memory_space<vmem>>, %arg6: memref<16x32xf32, #tpu.memory_space<vmem>>, %arg7: memref<1x16xf32, #tpu.memory_space<vmem>>, %arg8: memref<4x16xf32, #tpu.memory_space<vmem>>) attributes {dimension_semantics = [], scalar_prefetch = 0 : i64, scratch_operands = 0 : i64, tpu.core_type = #tpu.core_type<tc>} {
    %c0 = arith.constant 0 : index
    %c0_0 = arith.constant 0 : index
    %0 = vector.load %arg0[%c0, %c0_0] : memref<32x16xf32, #tpu.memory_space<vmem>>, vector<32x16xf32>
    %c0_1 = arith.constant 0 : index
    %c0_2 = arith.constant 0 : index
    %1 = vector.load %arg2[%c0_1, %c0_2] : memref<32x16xf32, #tpu.memory_space<vmem>>, vector<32x16xf32>
    %cst = arith.constant dense<0.000000e+00> : vector<32x32xf32>
    %2 = tpu.matmul %0, %1, %cst {dimension_numbers = #tpu.dot_dimension_numbers<[1], [1], [0], [0], [0, 0, 1, 0], [], []>} : vector<32x16xf32>, vector<32x16xf32>, vector<32x32xf32> -> vector<32x32xf32>
    %c0_3 = arith.constant 0 : index
    %c0_4 = arith.constant 0 : index
    %3 = vector.load %arg4[%c0_3, %c0_4] : memref<1x32xf32, #tpu.memory_space<vmem>>, vector<1x32xf32>
    %c0_5 = arith.constant 0 : index
    %c0_6 = arith.constant 0 : index
    %4 = vector.load %arg5[%c0_5, %c0_6] : memref<1x32xf32, #tpu.memory_space<vmem>>, vector<1x32xf32>
    %5 = arith.addf %3, %4 : vector<1x32xf32>
    %6 = vector.broadcast %5 : vector<1x32xf32> to vector<32x32xf32>
    %7 = arith.addf %2, %6 : vector<32x32xf32>
    %c0_7 = arith.constant 0 : index
    %c0_8 = arith.constant 0 : index
    %8 = vector.load %arg3[%c0_7, %c0_8] : memref<32x32xf32, #tpu.memory_space<vmem>>, vector<32x32xf32>
    %c0_9 = arith.constant 0 : index
    %c0_10 = arith.constant 0 : index
    %9 = vector.load %arg1[%c0_9, %c0_10] : memref<4x32xf32, #tpu.memory_space<vmem>>, vector<4x32xf32>
    %cst_11 = arith.constant dense<0.000000e+00> : vector<4x32xf32>
    %10 = tpu.matmul %9, %8, %cst_11 {dimension_numbers = #tpu.dot_dimension_numbers<[1], [1], [0], [0], [0, 0, 1, 0], [], []>} : vector<4x32xf32>, vector<32x32xf32>, vector<4x32xf32> -> vector<4x32xf32>
    %11 = vector.extract_strided_slice %7 {offsets = [0, 0], sizes = [4, 32], strides = [1, 1]} : vector<32x32xf32> to vector<4x32xf32>
    %12 = arith.addf %11, %10 : vector<4x32xf32>
    %13 = math.tanh %12 : vector<4x32xf32>
    %cst_12 = arith.constant dense<0.000000e+00> : vector<4x32xf32>
    %14 = tpu.matmul %13, %8, %cst_12 {dimension_numbers = #tpu.dot_dimension_numbers<[1], [1], [0], [0], [0, 0, 1, 0], [], []>} : vector<4x32xf32>, vector<32x32xf32>, vector<4x32xf32> -> vector<4x32xf32>
    %15 = vector.extract_strided_slice %7 {offsets = [4, 0], sizes = [4, 32], strides = [1, 1]} : vector<32x32xf32> to vector<4x32xf32>
    %16 = arith.addf %15, %14 : vector<4x32xf32>
    %17 = math.tanh %16 : vector<4x32xf32>
    %cst_13 = arith.constant dense<0.000000e+00> : vector<4x32xf32>
    %18 = tpu.matmul %17, %8, %cst_13 {dimension_numbers = #tpu.dot_dimension_numbers<[1], [1], [0], [0], [0, 0, 1, 0], [], []>} : vector<4x32xf32>, vector<32x32xf32>, vector<4x32xf32> -> vector<4x32xf32>
    %19 = vector.extract_strided_slice %7 {offsets = [8, 0], sizes = [4, 32], strides = [1, 1]} : vector<32x32xf32> to vector<4x32xf32>
    %20 = arith.addf %19, %18 : vector<4x32xf32>
    %21 = math.tanh %20 : vector<4x32xf32>
    %cst_14 = arith.constant dense<0.000000e+00> : vector<4x32xf32>
    %22 = tpu.matmul %21, %8, %cst_14 {dimension_numbers = #tpu.dot_dimension_numbers<[1], [1], [0], [0], [0, 0, 1, 0], [], []>} : vector<4x32xf32>, vector<32x32xf32>, vector<4x32xf32> -> vector<4x32xf32>
    %23 = vector.extract_strided_slice %7 {offsets = [12, 0], sizes = [4, 32], strides = [1, 1]} : vector<32x32xf32> to vector<4x32xf32>
    %24 = arith.addf %23, %22 : vector<4x32xf32>
    %25 = math.tanh %24 : vector<4x32xf32>
    %cst_15 = arith.constant dense<0.000000e+00> : vector<4x32xf32>
    %26 = tpu.matmul %25, %8, %cst_15 {dimension_numbers = #tpu.dot_dimension_numbers<[1], [1], [0], [0], [0, 0, 1, 0], [], []>} : vector<4x32xf32>, vector<32x32xf32>, vector<4x32xf32> -> vector<4x32xf32>
    %27 = vector.extract_strided_slice %7 {offsets = [16, 0], sizes = [4, 32], strides = [1, 1]} : vector<32x32xf32> to vector<4x32xf32>
    %28 = arith.addf %27, %26 : vector<4x32xf32>
    %29 = math.tanh %28 : vector<4x32xf32>
    %cst_16 = arith.constant dense<0.000000e+00> : vector<4x32xf32>
    %30 = tpu.matmul %29, %8, %cst_16 {dimension_numbers = #tpu.dot_dimension_numbers<[1], [1], [0], [0], [0, 0, 1, 0], [], []>} : vector<4x32xf32>, vector<32x32xf32>, vector<4x32xf32> -> vector<4x32xf32>
    %31 = vector.extract_strided_slice %7 {offsets = [20, 0], sizes = [4, 32], strides = [1, 1]} : vector<32x32xf32> to vector<4x32xf32>
    %32 = arith.addf %31, %30 : vector<4x32xf32>
    %33 = math.tanh %32 : vector<4x32xf32>
    %cst_17 = arith.constant dense<0.000000e+00> : vector<4x32xf32>
    %34 = tpu.matmul %33, %8, %cst_17 {dimension_numbers = #tpu.dot_dimension_numbers<[1], [1], [0], [0], [0, 0, 1, 0], [], []>} : vector<4x32xf32>, vector<32x32xf32>, vector<4x32xf32> -> vector<4x32xf32>
    %35 = vector.extract_strided_slice %7 {offsets = [24, 0], sizes = [4, 32], strides = [1, 1]} : vector<32x32xf32> to vector<4x32xf32>
    %36 = arith.addf %35, %34 : vector<4x32xf32>
    %37 = math.tanh %36 : vector<4x32xf32>
    %cst_18 = arith.constant dense<0.000000e+00> : vector<4x32xf32>
    %38 = tpu.matmul %37, %8, %cst_18 {dimension_numbers = #tpu.dot_dimension_numbers<[1], [1], [0], [0], [0, 0, 1, 0], [], []>} : vector<4x32xf32>, vector<32x32xf32>, vector<4x32xf32> -> vector<4x32xf32>
    %39 = vector.extract_strided_slice %7 {offsets = [28, 0], sizes = [4, 32], strides = [1, 1]} : vector<32x32xf32> to vector<4x32xf32>
    %40 = arith.addf %39, %38 : vector<4x32xf32>
    %41 = math.tanh %40 : vector<4x32xf32>
    %c0_19 = arith.constant 0 : index
    %c0_20 = arith.constant 0 : index
    %42 = vector.load %arg6[%c0_19, %c0_20] : memref<16x32xf32, #tpu.memory_space<vmem>>, vector<16x32xf32>
    %cst_21 = arith.constant dense<0.000000e+00> : vector<4x16xf32>
    %43 = tpu.matmul %41, %42, %cst_21 {dimension_numbers = #tpu.dot_dimension_numbers<[1], [1], [0], [0], [0, 0, 1, 0], [], []>} : vector<4x32xf32>, vector<16x32xf32>, vector<4x16xf32> -> vector<4x16xf32>
    %c0_22 = arith.constant 0 : index
    %c0_23 = arith.constant 0 : index
    %44 = vector.load %arg7[%c0_22, %c0_23] : memref<1x16xf32, #tpu.memory_space<vmem>>, vector<1x16xf32>
    %45 = vector.broadcast %44 : vector<1x16xf32> to vector<4x16xf32>
    %46 = arith.addf %43, %45 : vector<4x16xf32>
    %c0_24 = arith.constant 0 : index
    %c0_25 = arith.constant 0 : index
    %47 = vector.load %arg8[%c0_24, %c0_25] : memref<4x16xf32, #tpu.memory_space<vmem>>, vector<4x16xf32>
    tpu.vector_store %arg8[%c0_24, %c0_25], %46 {strides = array<i32>} : memref<4x16xf32, #tpu.memory_space<vmem>>, vector<4x16xf32>,
    return
  }
}

</mosaic_0001>

<bundles_post_ra>
// kernel: textrnn_forward.1
= control target key start
LH: loop header
LB: loop body
LE: loop exit
PB: predicated region body
PF: predicated region fallthrough
CT: control target
= control target key end

     0   :  { %vm44_vm0 = vcmask 130048   ;;  %vm103_vm1 = vcmask 261120   ;;  %s634_s0 = inlined_call_operand.vmem [shape: f32[32,16], index: 0, kind: input, shape index: {}]   ;;  %s635_s1 = inlined_call_operand.vmem [shape: f32[4,32], index: 1, kind: input, shape index: {}]   ;;  %s636_s2 = inlined_call_operand.vmem [shape: f32[32,16], index: 2, kind: input, shape index: {}]   ;;  %s637_s3 = inlined_call_operand.vmem [shape: f32[32,32], index: 3, kind: input, shape index: {}]   ;;  %s638_s4 = inlined_call_operand.vmem [shape: f32[1,32], index: 4, kind: input, shape index: {}]   ;;  %s639_s5 = inlined_call_operand.vmem [shape: f32[1,32], index: 5, kind: input, shape index: {}]   ;;  %s640_s6 = inlined_call_operand.vmem [shape: f32[16,32], index: 6, kind: input, shape index: {}]   ;;  %s641_s7 = inlined_call_operand.vmem [shape: f32[1,16], index: 7, kind: input, shape index: {}]   ;;  %s642_s8 = inlined_call_operand.hbm [shape: f32[4,16], index: 8, kind: output, shape index: {}]  }
   0x1   :  { %v37_v0 = vld [vmem:[%s636_s2 + $0x18] sm:$0xff]  ;;  %v36_v2 = vld [vmem:[%s636_s2 + $0x10] sm:$0xff] }
   0x2   :  { %v101_v1 = vld [vmem:[%s637_s3 + $0x18] sm:$0xff]  ;;  %385 = vmatpush.xpose.msk.msra.mxu0 %vm44_vm0, %v37_v0  ;;  %v100_v3 = vld [vmem:[%s637_s3 + $0x10] sm:$0xff] }
   0x3   :  { %393 = vmatpush.xpose.msk.msra.mxu1 %vm103_vm1, %v101_v1  ;;  %398 = vmatpush.xpose.msk.msra.mxu2 %vm103_vm1, %v101_v1 }
   0x4   :  { %403 = vmatpush.xpose.msk.msra.mxu3 %vm103_vm1, %v101_v1 }
   0x5   :  { %13 = vsyncpa [#allocation3], 0  ;;  %v35_v4 = vld [vmem:[%s636_s2 + $0x8] sm:$0xff]  ;;  %v34_v6 = vld [vmem:[%s636_s2] sm:$0xff]  ;;  %s480_s13 = smov [#allocation2]   ;;  %vm367_vm2 = vcmask 125952  }
   0x6   :  { %386 = vmatpush.xpose.msk.msra.mxu0 %vm44_vm0, %v36_v2  ;;  %v99_v5 = vld [vmem:[%s637_s3 + $0x8] sm:$0xff]  ;;  %v98_v7 = vld [vmem:[%s637_s3] sm:$0xff]  ;;  %v32_v30 = vld [vmem:[%s634_s0 + $0x10] sm:$0xff]  ;;  %s374_s14 = sshll.u32 %s480_s13, 4  ;;  %s375_s14 = int_to_ptr.vmem [resolvable:$true] %s374_s14 }
   0x7   :  { %394 = vmatpush.xpose.msk.msra.mxu1 %vm103_vm1, %v100_v3  ;;  %399 = vmatpush.xpose.msk.msra.mxu2 %vm103_vm1, %v100_v3  ;;  %v30_v8 = vld [vmem:[%s634_s0] sm:$0xff]  ;;  %v31_v19 = vld [vmem:[%s634_s0 + $0x8] sm:$0xff]  ;;  %v33_v41 = vld [vmem:[%s634_s0 + $0x18] sm:$0xff] }
   0x8   :  { %404 = vmatpush.xpose.msk.msra.mxu3 %vm103_vm1, %v100_v3  ;;  %v102_v9 = vld [vmem:[%s635_s1] sm:$0xf]  ;;  %v332_v52 = vld [vmem:[%s640_s6 + $0x8] sm:$0xff] }
   0x9   :  { %v38_v10 = vld [vmem:[%s638_s4] sm:$0x1] }
   0xa   :  { %387 = vmatpush.xpose.msk.msra.mxu0 %vm44_vm0, %v35_v4  ;;  %v39_v11 = vld [vmem:[%s639_s5] sm:$0x1] }
   0xb   :  { %395 = vmatpush.xpose.msk.msra.mxu1 %vm103_vm1, %v99_v5  ;;  %400 = vmatpush.xpose.msk.msra.mxu2 %vm103_vm1, %v99_v5  ;;  %v40_v12 = vadd.f32 %v39_v11, %v38_v10  ;;  %v331_v53 = vld [vmem:[%s640_s6] sm:$0xff]  ;;  %s376_s6 = sshll.u32 %s642_s8, 4  ;;  %s377_s6 = int_to_ptr.hbm [resolvable:$true] %s376_s6 }
   0xc   :  { %405 = vmatpush.xpose.msk.msra.mxu3 %vm103_vm1, %v99_v5  ;;  %v437_v59 = vld [vmem:[%s641_s7] ss:$0 sm:$0xff] }
   0xd   :  { %v42_v13 = vperm.slane %v40_v12, 0 }
   0xe   :  { %388 = vmatpush.xpose.msk.msra.mxu0 %vm44_vm0, %v34_v6 }
   0xf   :  { %396 = vmatpush.xpose.msk.msra.mxu1 %vm103_vm1, %v98_v7  ;;  %401 = vmatpush.xpose.msk.msra.mxu2 %vm103_vm1, %v98_v7 }
  0x10   :  { %406 = vmatpush.xpose.msk.msra.mxu3 %vm103_vm1, %v98_v7 }
  0x11   :  { %389 = vmatmul.msk.f32.vlgmr.msra.gmra.mxu0 %vm44_vm0, %v30_v8 }
  0x12   :  { %397 = vmatmul.msk.f32.vlgmr.msra.gmra.mxu1 %vm103_vm1, %v102_v9  ;;  %423 = vmatpush.xpose.msk.msrb.mxu0 %vm103_vm1, %v101_v1 }
  0x13   :  { %408 = vmatpush.xpose.msk.msrb.mxu1 %vm103_vm1, %v101_v1  ;;  %413 = vmatpush.xpose.msk.msrb.mxu2 %vm103_vm1, %v101_v1 }
  0x14   :  { %418 = vmatpush.xpose.msk.msrb.mxu3 %vm103_vm1, %v101_v1 }
  0x16   :  { %424 = vmatpush.xpose.msk.msrb.mxu0 %vm103_vm1, %v100_v3 }
  0x17   :  { %409 = vmatpush.xpose.msk.msrb.mxu1 %vm103_vm1, %v100_v3  ;;  %414 = vmatpush.xpose.msk.msrb.mxu2 %vm103_vm1, %v100_v3 }
  0x18   :  { %419 = vmatpush.xpose.msk.msrb.mxu3 %vm103_vm1, %v100_v3 }
  0x19   :  { %390 = vmatmul.msk.f32.gmra.mxu0 %vm44_vm0, %v31_v19 }
  0x1a   :  { %425 = vmatpush.xpose.msk.msrb.mxu0 %vm103_vm1, %v99_v5 }
  0x1b   :  { %410 = vmatpush.xpose.msk.msrb.mxu1 %vm103_vm1, %v99_v5  ;;  %415 = vmatpush.xpose.msk.msrb.mxu2 %vm103_vm1, %v99_v5 }
  0x1c   :  { %420 = vmatpush.xpose.msk.msrb.mxu3 %vm103_vm1, %v99_v5 }
  0x1e   :  { %426 = vmatpush.xpose.msk.msrb.mxu0 %vm103_vm1, %v98_v7 }
  0x1f   :  { %411 = vmatpush.xpose.msk.msrb.mxu1 %vm103_vm1, %v98_v7  ;;  %416 = vmatpush.xpose.msk.msrb.mxu2 %vm103_vm1, %v98_v7 }
  0x20   :  { %421 = vmatpush.xpose.msk.msrb.mxu3 %vm103_vm1, %v98_v7 }
  0x21   :  { %391 = vmatmul.msk.f32.gmra.mxu0 %vm44_vm0, %v32_v30 }
  0x23   :  { %428 = vmatpush.xpose.msk.msra.mxu1 %vm103_vm1, %v101_v1 }
  0x27   :  { %429 = vmatpush.xpose.msk.msra.mxu1 %vm103_vm1, %v100_v3 }
  0x29   :  { %392 = vmatmul.msk.f32.gmra.mxu0 %vm44_vm0, %v33_v41 }
  0x2b   :  { %430 = vmatpush.xpose.msk.msra.mxu1 %vm103_vm1, %v99_v5 }
  0x2f   :  { %431 = vmatpush.xpose.msk.msra.mxu1 %vm103_vm1, %v98_v7 }
  0x8e   :  { %v86_v14 = vpop.f32.mrf.mxu0 }
  0x8f   :  { %v136_v15 = vpop.f32.mrf.mxu1  ;;  %v87_v16 = vadd.f32 %v86_v14, %v42_v13 }
  0x91   :  { %v139_v17 = vadd.f32 %v136_v15, %v87_v16 }
  0x93   :  { %438 = vtanh.f32 %v139_v17 }
  0x96   :  { %v89_v25 = vpop.f32.mrf.mxu0 }
  0x97   :  { %v90_v26 = vadd.f32 %v89_v25, %v42_v13 }
  0x99   :  { %v439_v18 = vpop.eup %438 }
  0x9a   :  { %402 = vmatmul.msk.f32.vlgmr.msra.gmra.mxu2 %vm103_vm1, %v439_v18 }
  0x9b   :  { %433 = vmatpush.xpose.msk.msra.mxu2 %vm103_vm1, %v332_v52 }
  0x9e   :  { %v92_v36 = vpop.f32.mrf.mxu0 }
  0x9f   :  { %v93_v37 = vadd.f32 %v92_v36, %v42_v13  ;;  %434 = vmatpush.xpose.msk.msra.mxu2 %vm103_vm1, %v331_v53 }
  0xa6   :  { %v95_v47 = vpop.f32.mrf.mxu0 }
  0xa7   :  { %v96_v48 = vadd.f32 %v95_v47, %v42_v13 }
 0x11d   :  { %v161_v20 = vpop.f32.mrf.mxu2 }
 0x11e   :  { %v165_v21 = vrot.slane %v161_v20, 4 }
 0x120   :  { %v167_v22 = vadd.f32 %v165_v21, %v87_v16 }
 0x122   :  { %440 = vtanh.f32 %v167_v22 }
 0x128   :  { %v441_v23 = vpop.eup %440 }
 0x129   :  { %v170_v24 = vrot.slane %v441_v23, 4 }
 0x12b   :  { %407 = vmatmul.msk.f32.vlgmr.msra.gmra.mxu3 %vm103_vm1, %v170_v24 }
 0x1ae   :  { %v190_v27 = vpop.f32.mrf.mxu3 }
 0x1af   :  { %v193_v28 = vadd.f32 %v190_v27, %v90_v26 }
 0x1b1   :  { %442 = vtanh.f32 %v193_v28 }
 0x1b7   :  { %v443_v29 = vpop.eup %442 }
 0x1b8   :  { %412 = vmatmul.msk.f32.vlgmr.msrb.gmra.mxu1 %vm103_vm1, %v443_v29 }
 0x235   :  { %v215_v31 = vpop.f32.mrf.mxu1 }
 0x236   :  { %v219_v32 = vrot.slane %v215_v31, 4 }
 0x238   :  { %v221_v33 = vadd.f32 %v219_v32, %v90_v26 }
 0x23a   :  { %444 = vtanh.f32 %v221_v33 }
 0x240   :  { %v445_v34 = vpop.eup %444 }
 0x241   :  { %v224_v35 = vrot.slane %v445_v34, 4 }
 0x243   :  { %417 = vmatmul.msk.f32.vlgmr.msrb.gmra.mxu2 %vm103_vm1, %v224_v35 }
 0x2c6   :  { %v244_v38 = vpop.f32.mrf.mxu2 }
 0x2c7   :  { %v247_v39 = vadd.f32 %v244_v38, %v93_v37 }
 0x2c9   :  { %446 = vtanh.f32 %v247_v39 }
 0x2cf   :  { %v447_v40 = vpop.eup %446 }
 0x2d0   :  { %422 = vmatmul.msk.f32.vlgmr.msrb.gmra.mxu3 %vm103_vm1, %v447_v40 }
 0x353   :  { %v269_v42 = vpop.f32.mrf.mxu3 }
 0x354   :  { %v273_v43 = vrot.slane %v269_v42, 4 }
 0x356   :  { %v275_v44 = vadd.f32 %v273_v43, %v93_v37 }
 0x358   :  { %448 = vtanh.f32 %v275_v44 }
 0x35e   :  { %v449_v45 = vpop.eup %448 }
 0x35f   :  { %v278_v46 = vrot.slane %v449_v45, 4 }
 0x361   :  { %427 = vmatmul.msk.f32.vlgmr.msrb.gmra.mxu0 %vm103_vm1, %v278_v46 }
 0x3de   :  { %v298_v49 = vpop.f32.mrf.mxu0 }
 0x3df   :  { %v301_v50 = vadd.f32 %v298_v49, %v96_v48 }
 0x3e1   :  { %450 = vtanh.f32 %v301_v50 }
 0x3e7   :  { %v451_v51 = vpop.eup %450 }
 0x3e8   :  { %432 = vmatmul.msk.f32.vlgmr.msra.gmra.mxu1 %vm103_vm1, %v451_v51 }
 0x465   :  { %v323_v54 = vpop.f32.mrf.mxu1 }
 0x466   :  { %v327_v55 = vrot.slane %v323_v54, 4 }
 0x468   :  { %v329_v56 = vadd.f32 %v327_v55, %v96_v48 }
 0x46a   :  { %452 = vtanh.f32 %v329_v56 }
 0x470   :  { %v453_v57 = vpop.eup %452 }
 0x471   :  { %v338_v58 = vrot.slane %v453_v57, 4 }
 0x473   :  { %435 = vmatmul.msk.f32.vlgmr.msra.gmra.mxu2 %vm103_vm1, %v338_v58 }
 0x4f6   :  { %v364_v60 = vpop.f32.mrf.mxu2 }
 0x4f7   :  { %v365_v61 = vadd.f32 %v437_v59, %v364_v60 }
 0x4f9   :  { %368 = vst.msk [vmem:[#allocation2] sm:$0xf] %vm367_vm2, %v365_v61 }
 0x4fa   :  { %379 = dma.vmem_to_hbm [thread:$0]  %s375_s14, 64, %s377_s6, [#allocation3]  }
 0x4fb   :  { %478 = dma.done.wait [#allocation3], 64  }
 0x4fc   :  { %479 = vsyncadd [#allocation3], 4294967232 }
 0x4fd   :  { %384 = vsyncpa [#allocation3], 1 }

</bundles_post_ra>
